<compile_context>
chip_gen: v5e
topology: v5e:2x2
jax: 0.10.0
libtpu: 0.0.40
codegen_flags: <defaults>
</compile_context>

<pallas_src>
import functools

import jax
import jax.numpy as jnp
from jax.experimental import pallas as pl
from jax.experimental.pallas import tpu as pltpu


def _dilated_stack_kernel(x_ref, wfg_ref, bfg_ref, wr_ref, br_ref,
                          ws_ref, bs_ref, skips_ref, res_ref, *, dilations):
    """Full WaveNet dilation stack for one batch element.

    x_ref      : (Cr, T)            residual-channel activations, time on lanes
    wfg_ref    : (L, 2Cr, 2Cr)      fused [[wf0|wf1],[wg0|wg1]]   (bf16)
    bfg_ref    : (L, 2Cr, 1)        fused [bf; bg]                (f32)
    wr_ref/br  : (L, Cr, Cr)/(L, Cr, 1)   resconv1_1 (1x1)
    ws_ref/bs  : (L, Cs, Cr)/(L, Cs, 1)   skipconv1_1 (1x1)
    skips_ref  : (L, Cs, T)
    res_ref    : (Cr, T)
    """
    x = x_ref[...].astype(jnp.float32)            # residual, stays on-chip
    Cr, T = x.shape
    mm_dtype = wfg_ref.dtype                      # bf16 matmul operands

    for l, d in enumerate(dilations):             # depth is static -> unrolled
        # Causal dilated conv (k=2): y[:, t] = W0 @ x[:, t-d] + W1 @ x[:, t] + b
        # Delayed tap: shift along the time (lane) axis, zero-filled at the front.
        if d < T:
            x_shift = jnp.concatenate(
                [jnp.zeros((Cr, d), jnp.float32), x[:, :T - d]], axis=1)
        else:
            # dilation >= sequence length: the delayed tap sees only padding.
            x_shift = jnp.zeros((Cr, T), jnp.float32)

        # Stack delayed + current taps on sublanes -> one fused MXU matmul
        # produces [filter; gate] in one push (K = 2Cr, M = 2Cr, N = T).
        xx = jnp.concatenate([x_shift, x], axis=0)            # (2Cr, T) f32
        fg = jnp.dot(wfg_ref[l], xx.astype(mm_dtype),
                     preferred_element_type=jnp.float32) + bfg_ref[l]
        filt = fg[:Cr, :]                                      # sublane-aligned
        gate = fg[Cr:, :]

        # tanh(filter) * sigmoid(gate); sigmoid via tanh identity (1 EUP op).
        gated = jnp.tanh(filt) * (0.5 * (jnp.tanh(0.5 * gate) + 1.0))

        # 1x1 convs == channel matmuls (f32 accumulate, bf16 operands).
        fx = jnp.dot(wr_ref[l], gated.astype(mm_dtype),
                     preferred_element_type=jnp.float32) + br_ref[l]
        skip = jnp.dot(ws_ref[l], fx.astype(mm_dtype),
                       preferred_element_type=jnp.float32) + bs_ref[l]

        skips_ref[l, :, :] = skip.astype(skips_ref.dtype)      # lane-dense store
        x = fx + x                                             # residual carry

    res_ref[...] = x.astype(res_ref.dtype)


def dilated_stack_forward(x_bct, packed):
    """Mirrors DilatedStack.forward. x_bct: (B, Cr, T) NCW, like PyTorch."""
    B, Cr, T = x_bct.shape
    depth = packed["wfg"].shape[0]
    assert packed["wfg"].shape[1] == 2 * Cr
    Cs = packed["ws"].shape[1]
    dilations = tuple(2 ** l for l in range(depth))

    kernel = functools.partial(_dilated_stack_kernel, dilations=dilations)

    skips, residual = pl.pallas_call(
        kernel,
        out_shape=(jax.ShapeDtypeStruct((depth, B, Cs, T), x_bct.dtype),
                   jax.ShapeDtypeStruct((B, Cr, T), x_bct.dtype)),
        grid=(B,),
        in_specs=[
            pl.BlockSpec((None, Cr, T), lambda b: (b, 0, 0)),            # x[b]
            pl.BlockSpec((depth, 2 * Cr, 2 * Cr), lambda b: (0, 0, 0)),  # Wfg
            pl.BlockSpec((depth, 2 * Cr, 1), lambda b: (0, 0, 0)),       # bfg
            pl.BlockSpec((depth, Cr, Cr), lambda b: (0, 0, 0)),          # Wr
            pl.BlockSpec((depth, Cr, 1), lambda b: (0, 0, 0)),           # br
            pl.BlockSpec((depth, Cs, Cr), lambda b: (0, 0, 0)),          # Ws
            pl.BlockSpec((depth, Cs, 1), lambda b: (0, 0, 0)),           # bs
        ],
        out_specs=(
            pl.BlockSpec((depth, None, Cs, T), lambda b: (0, b, 0, 0)),  # skips
            pl.BlockSpec((None, Cr, T), lambda b: (b, 0, 0)),            # residual
        ),
        compiler_params=pltpu.CompilerParams(
            dimension_semantics=("parallel",),        # megacore over batch (v7x)
            vmem_limit_bytes=32 * 1024 * 1024),
    )(x_bct, packed["wfg"], packed["bfg"], packed["wr"], packed["br"],
      packed["ws"], packed["bs"])
    return skips, residual


def init_params(key, residual_size, skip_size, dilation_depth, scale=0.3):
    """Per-layer params in PyTorch (Cout, Cin) convention.

    wf0/wg0 = causal-conv tap at t-dilation, wf1/wg1 = tap at t.
    """
    layer_params = []
    for _ in range(dilation_depth):
        keys = jax.random.split(key, 11)
        key = keys[-1]
        n = jax.random.normal
        p = {
            "wf0": scale * n(keys[0], (residual_size, residual_size), jnp.float32),
            "wf1": scale * n(keys[1], (residual_size, residual_size), jnp.float32),
            "bf":  scale * n(keys[2], (residual_size,), jnp.float32),
            "wg0": scale * n(keys[3], (residual_size, residual_size), jnp.float32),
            "wg1": scale * n(keys[4], (residual_size, residual_size), jnp.float32),
            "bg":  scale * n(keys[5], (residual_size,), jnp.float32),
            "wr":  scale * n(keys[6], (residual_size, residual_size), jnp.float32),
            "br":  scale * n(keys[7], (residual_size,), jnp.float32),
            "ws":  scale * n(keys[8], (skip_size, residual_size), jnp.float32),
            "bs":  scale * n(keys[9], (skip_size,), jnp.float32),
        }
        layer_params.append(p)
    return layer_params


def pack_params(layer_params, matmul_dtype=jnp.bfloat16):
    """Stack per-layer params and fuse filter+gate weights into one matrix.

    Wfg = [[wf0 | wf1],
           [wg0 | wg1]]   acting on [x_shift; x]  -> [filter; gate].
    Matmul weights are cast to `matmul_dtype` (bf16 MXU path); biases stay f32.
    """
    def fuse_fg(p):
        top = jnp.concatenate([p["wf0"], p["wf1"]], axis=1)
        bot = jnp.concatenate([p["wg0"], p["wg1"]], axis=1)
        return jnp.concatenate([top, bot], axis=0)            # (2Cr, 2Cr)

    wfg = jnp.stack([fuse_fg(p) for p in layer_params], axis=0)
    bfg = jnp.stack([jnp.concatenate([p["bf"], p["bg"]])[:, None]
                     for p in layer_params], axis=0)
    wr = jnp.stack([p["wr"] for p in layer_params], axis=0)
    br = jnp.stack([p["br"][:, None] for p in layer_params], axis=0)
    ws = jnp.stack([p["ws"] for p in layer_params], axis=0)
    bs = jnp.stack([p["bs"][:, None] for p in layer_params], axis=0)
    return {
        "wfg": wfg.astype(matmul_dtype), "bfg": bfg.astype(jnp.float32),
        "wr": wr.astype(matmul_dtype),   "br": br.astype(jnp.float32),
        "ws": ws.astype(matmul_dtype),   "bs": bs.astype(jnp.float32),
    }


def _reference_forward(x_bct, layer_params, matmul_dtype=jnp.float32):
    """Pure-JAX reference mirroring the PyTorch module (NCW throughout)."""
    x = x_bct.astype(jnp.float32)
    T = x.shape[-1]

    def mm(w, v):   # (Cout,Cin) x (B,Cin,T) -> (B,Cout,T), f32 accumulation
        return jnp.einsum("oi,bit->bot", w.astype(matmul_dtype),
                          v.astype(matmul_dtype),
                          preferred_element_type=jnp.float32)

    skips = []
    for l, p in enumerate(layer_params):
        d = 2 ** l
        if d < T:
            x_shift = jnp.pad(x, ((0, 0), (0, 0), (d, 0)))[..., :T]
        else:
            x_shift = jnp.zeros_like(x)
        filt = mm(p["wf0"], x_shift) + mm(p["wf1"], x) + p["bf"][None, :, None]
        gate = mm(p["wg0"], x_shift) + mm(p["wg1"], x) + p["bg"][None, :, None]
        fx = jnp.tanh(filt) * jax.nn.sigmoid(gate)
        fx = mm(p["wr"], fx) + p["br"][None, :, None]
        skip = mm(p["ws"], fx) + p["bs"][None, :, None]
        x = fx + x
        skips.append(skip)
    return jnp.stack(skips, axis=0), x


if __name__ == "__main__":
    # Small shapes consistent with the module: batch=2, residual=16, skip=8,
    # T=16, dilation_depth=3 (dilations 1, 2, 4).
    B, Cr, Cs, T, depth = 2, 16, 8, 16, 3

    key = jax.random.PRNGKey(0)
    k_x, k_p = jax.random.split(key)
    x = jax.random.normal(k_x, (B, Cr, T), dtype=jnp.float32)   # NCW, like PyTorch
    layer_params = init_params(k_p, Cr, Cs, depth)
    packed = pack_params(layer_params, matmul_dtype=jnp.bfloat16)

    skips, residual = dilated_stack_forward(x, packed)
    skips = jax.block_until_ready(skips)
    residual = jax.block_until_ready(residual)

    assert skips.shape == (depth, B, Cs, T), skips.shape
    assert residual.shape == (B, Cr, T), residual.shape

    # Algorithmic check: reference using the same bf16 matmul operands (tight).
    ref_s_bf, ref_r_bf = _reference_forward(x, layer_params,
                                            matmul_dtype=jnp.bfloat16)
    assert jnp.allclose(skips, ref_s_bf, atol=2e-2, rtol=2e-2)
    assert jnp.allclose(residual, ref_r_bf, atol=2e-2, rtol=2e-2)

    # Precision check against the full-f32 (PyTorch-equivalent) reference.
    ref_s_f32, ref_r_f32 = _reference_forward(x, layer_params,
                                              matmul_dtype=jnp.float32)
    assert jnp.allclose(skips, ref_s_f32, atol=1e-1, rtol=1e-1)
    assert jnp.allclose(residual, ref_r_f32, atol=1e-1, rtol=1e-1)

    print("KERNEL_OK")
</pallas_src>

<mosaic_0001>
module attributes {stable_mosaic.version = 11 : i64} {
  func.func @_dilated_stack_kernel(%arg0: i32, %arg1: memref<1x16x16xf32, #tpu.memory_space<vmem>>, %arg2: memref<3x32x32xbf16, #tpu.memory_space<vmem>>, %arg3: memref<3x32x1xf32, #tpu.memory_space<vmem>>, %arg4: memref<3x16x16xbf16, #tpu.memory_space<vmem>>, %arg5: memref<3x16x1xf32, #tpu.memory_space<vmem>>, %arg6: memref<3x8x16xbf16, #tpu.memory_space<vmem>>, %arg7: memref<3x8x1xf32, #tpu.memory_space<vmem>>, %arg8: memref<3x1x8x16xf32, #tpu.memory_space<vmem>>, %arg9: memref<1x16x16xf32, #tpu.memory_space<vmem>>) attributes {dimension_semantics = [#tpu.dimension_semantics<parallel>], iteration_bounds = array<i64: 2>, scalar_prefetch = 0 : i64, scratch_operands = 0 : i64, tpu.core_type = #tpu.core_type<tc>, window_params = [{transform_indices = @transform_0, window_bounds = array<i64: 1, 16, 16>}, {pipeline_mode = #tpu.pipeline_mode<synchronous>, transform_indices = @transform_1, window_bounds = array<i64: 3, 32, 32>}, {pipeline_mode = #tpu.pipeline_mode<synchronous>, transform_indices = @transform_2, window_bounds = array<i64: 3, 32, 1>}, {pipeline_mode = #tpu.pipeline_mode<synchronous>, transform_indices = @transform_3, window_bounds = array<i64: 3, 16, 16>}, {pipeline_mode = #tpu.pipeline_mode<synchronous>, transform_indices = @transform_4, window_bounds = array<i64: 3, 16, 1>}, {pipeline_mode = #tpu.pipeline_mode<synchronous>, transform_indices = @transform_5, window_bounds = array<i64: 3, 8, 16>}, {pipeline_mode = #tpu.pipeline_mode<synchronous>, transform_indices = @transform_6, window_bounds = array<i64: 3, 8, 1>}, {transform_indices = @transform_7, window_bounds = array<i64: 3, 1, 8, 16>}, {transform_indices = @transform_8, window_bounds = array<i64: 1, 16, 16>}]} {
    %c0 = arith.constant 0 : index
    %c0_0 = arith.constant 0 : index
    %c0_1 = arith.constant 0 : index
    %0 = vector.load %arg1[%c0, %c0_0, %c0_1] : memref<1x16x16xf32, #tpu.memory_space<vmem>>, vector<1x16x16xf32>
    %1 = vector.shape_cast %0 : vector<1x16x16xf32> to vector<16x16xf32>
    %cst = arith.constant 0.000000e+00 : f32
    %2 = vector.broadcast %cst : f32 to vector<16x1xf32>
    %3 = vector.extract_strided_slice %1 {offsets = [0, 0], sizes = [16, 15], strides = [1, 1]} : vector<16x16xf32> to vector<16x15xf32>
    %4 = tpu.concatenate %2, %3 in 1 : vector<16x1xf32>, vector<16x15xf32> -> vector<16x16xf32>
    %5 = tpu.concatenate %4, %1 in 0 : vector<16x16xf32>, vector<16x16xf32> -> vector<32x16xf32>
    %c0_2 = arith.constant 0 : index
    %c0_3 = arith.constant 0 : index
    %c0_4 = arith.constant 0 : index
    %6 = vector.load %arg2[%c0_2, %c0_3, %c0_4] : memref<3x32x32xbf16, #tpu.memory_space<vmem>>, vector<1x32x32xbf16>
    %7 = vector.shape_cast %6 : vector<1x32x32xbf16> to vector<32x32xbf16>
    %8 = arith.truncf %5 : vector<32x16xf32> to vector<32x16xbf16>
    %cst_5 = arith.constant dense<0.000000e+00> : vector<32x16xf32>
    %9 = tpu.matmul %7, %8, %cst_5 {dimension_numbers = #tpu.dot_dimension_numbers<[1], [0], [0], [1], [0, 0, 1, 1], [], []>} : vector<32x32xbf16>, vector<32x16xbf16>, vector<32x16xf32> -> vector<32x16xf32>
    %c0_6 = arith.constant 0 : index
    %c0_7 = arith.constant 0 : index
    %c0_8 = arith.constant 0 : index
    %10 = vector.load %arg3[%c0_6, %c0_7, %c0_8] : memref<3x32x1xf32, #tpu.memory_space<vmem>>, vector<1x32x1xf32>
    %11 = vector.shape_cast %10 : vector<1x32x1xf32> to vector<32x1xf32>
    %12 = vector.broadcast %11 : vector<32x1xf32> to vector<32x16xf32>
    %13 = arith.addf %9, %12 : vector<32x16xf32>
    %14 = vector.extract_strided_slice %13 {offsets = [0, 0], sizes = [16, 16], strides = [1, 1]} : vector<32x16xf32> to vector<16x16xf32>
    %15 = vector.extract_strided_slice %13 {offsets = [16, 0], sizes = [16, 16], strides = [1, 1]} : vector<32x16xf32> to vector<16x16xf32>
    %16 = math.tanh %14 : vector<16x16xf32>
    %cst_9 = arith.constant 5.000000e-01 : f32
    %17 = vector.broadcast %cst_9 : f32 to vector<16x16xf32>
    %18 = arith.mulf %17, %15 : vector<16x16xf32>
    %19 = math.tanh %18 : vector<16x16xf32>
    %cst_10 = arith.constant 1.000000e+00 : f32
    %20 = vector.broadcast %cst_10 : f32 to vector<16x16xf32>
    %21 = arith.addf %19, %20 : vector<16x16xf32>
    %cst_11 = arith.constant 5.000000e-01 : f32
    %22 = vector.broadcast %cst_11 : f32 to vector<16x16xf32>
    %23 = arith.mulf %22, %21 : vector<16x16xf32>
    %24 = arith.mulf %16, %23 : vector<16x16xf32>
    %c0_12 = arith.constant 0 : index
    %c0_13 = arith.constant 0 : index
    %c0_14 = arith.constant 0 : index
    %25 = vector.load %arg4[%c0_12, %c0_13, %c0_14] : memref<3x16x16xbf16, #tpu.memory_space<vmem>>, vector<1x16x16xbf16>
    %26 = vector.shape_cast %25 : vector<1x16x16xbf16> to vector<16x16xbf16>
    %27 = arith.truncf %24 : vector<16x16xf32> to vector<16x16xbf16>
    %cst_15 = arith.constant dense<0.000000e+00> : vector<16x16xf32>
    %28 = tpu.matmul %26, %27, %cst_15 {dimension_numbers = #tpu.dot_dimension_numbers<[1], [0], [0], [1], [0, 0, 1, 1], [], []>} : vector<16x16xbf16>, vector<16x16xbf16>, vector<16x16xf32> -> vector<16x16xf32>
    %c0_16 = arith.constant 0 : index
    %c0_17 = arith.constant 0 : index
    %c0_18 = arith.constant 0 : index
    %29 = vector.load %arg5[%c0_16, %c0_17, %c0_18] : memref<3x16x1xf32, #tpu.memory_space<vmem>>, vector<1x16x1xf32>
    %30 = vector.shape_cast %29 : vector<1x16x1xf32> to vector<16x1xf32>
    %31 = vector.broadcast %30 : vector<16x1xf32> to vector<16x16xf32>
    %32 = arith.addf %28, %31 : vector<16x16xf32>
    %c0_19 = arith.constant 0 : index
    %c0_20 = arith.constant 0 : index
    %c0_21 = arith.constant 0 : index
    %33 = vector.load %arg6[%c0_19, %c0_20, %c0_21] : memref<3x8x16xbf16, #tpu.memory_space<vmem>>, vector<1x8x16xbf16>
    %34 = vector.shape_cast %33 : vector<1x8x16xbf16> to vector<8x16xbf16>
    %35 = arith.truncf %32 : vector<16x16xf32> to vector<16x16xbf16>
    %cst_22 = arith.constant dense<0.000000e+00> : vector<8x16xf32>
    %36 = tpu.matmul %34, %35, %cst_22 {dimension_numbers = #tpu.dot_dimension_numbers<[1], [0], [0], [1], [0, 0, 1, 1], [], []>} : vector<8x16xbf16>, vector<16x16xbf16>, vector<8x16xf32> -> vector<8x16xf32>
    %c0_23 = arith.constant 0 : index
    %c0_24 = arith.constant 0 : index
    %c0_25 = arith.constant 0 : index
    %37 = vector.load %arg7[%c0_23, %c0_24, %c0_25] : memref<3x8x1xf32, #tpu.memory_space<vmem>>, vector<1x8x1xf32>
    %38 = vector.shape_cast %37 : vector<1x8x1xf32> to vector<8x1xf32>
    %39 = vector.broadcast %38 : vector<8x1xf32> to vector<8x16xf32>
    %40 = arith.addf %36, %39 : vector<8x16xf32>
    %c0_26 = arith.constant 0 : index
    %c0_27 = arith.constant 0 : index
    %c0_28 = arith.constant 0 : index
    %c0_29 = arith.constant 0 : index
    %41 = vector.load %arg8[%c0_26, %c0_27, %c0_28, %c0_29] : memref<3x1x8x16xf32, #tpu.memory_space<vmem>>, vector<1x1x8x16xf32>
    %42 = vector.shape_cast %41 : vector<1x1x8x16xf32> to vector<8x16xf32>
    %43 = vector.shape_cast %40 : vector<8x16xf32> to vector<1x1x8x16xf32>
    tpu.vector_store %arg8[%c0_26, %c0_27, %c0_28, %c0_29], %43 {strides = array<i32>} : memref<3x1x8x16xf32, #tpu.memory_space<vmem>>, vector<1x1x8x16xf32>,
    %44 = arith.addf %32, %1 : vector<16x16xf32>
    %cst_30 = arith.constant 0.000000e+00 : f32
    %45 = vector.broadcast %cst_30 : f32 to vector<16x2xf32>
    %46 = vector.extract_strided_slice %44 {offsets = [0, 0], sizes = [16, 14], strides = [1, 1]} : vector<16x16xf32> to vector<16x14xf32>
    %47 = tpu.concatenate %45, %46 in 1 : vector<16x2xf32>, vector<16x14xf32> -> vector<16x16xf32>
    %48 = tpu.concatenate %47, %44 in 0 : vector<16x16xf32>, vector<16x16xf32> -> vector<32x16xf32>
    %c1 = arith.constant 1 : index
    %c0_31 = arith.constant 0 : index
    %c0_32 = arith.constant 0 : index
    %49 = vector.load %arg2[%c1, %c0_31, %c0_32] : memref<3x32x32xbf16, #tpu.memory_space<vmem>>, vector<1x32x32xbf16>
    %50 = vector.shape_cast %49 : vector<1x32x32xbf16> to vector<32x32xbf16>
    %51 = arith.truncf %48 : vector<32x16xf32> to vector<32x16xbf16>
    %cst_33 = arith.constant dense<0.000000e+00> : vector<32x16xf32>
    %52 = tpu.matmul %50, %51, %cst_33 {dimension_numbers = #tpu.dot_dimension_numbers<[1], [0], [0], [1], [0, 0, 1, 1], [], []>} : vector<32x32xbf16>, vector<32x16xbf16>, vector<32x16xf32> -> vector<32x16xf32>
    %c1_34 = arith.constant 1 : index
    %c0_35 = arith.constant 0 : index
    %c0_36 = arith.constant 0 : index
    %53 = vector.load %arg3[%c1_34, %c0_35, %c0_36] : memref<3x32x1xf32, #tpu.memory_space<vmem>>, vector<1x32x1xf32>
    %54 = vector.shape_cast %53 : vector<1x32x1xf32> to vector<32x1xf32>
    %55 = vector.broadcast %54 : vector<32x1xf32> to vector<32x16xf32>
    %56 = arith.addf %52, %55 : vector<32x16xf32>
    %57 = vector.extract_strided_slice %56 {offsets = [0, 0], sizes = [16, 16], strides = [1, 1]} : vector<32x16xf32> to vector<16x16xf32>
    %58 = vector.extract_strided_slice %56 {offsets = [16, 0], sizes = [16, 16], strides = [1, 1]} : vector<32x16xf32> to vector<16x16xf32>
    %59 = math.tanh %57 : vector<16x16xf32>
    %cst_37 = arith.constant 5.000000e-01 : f32
    %60 = vector.broadcast %cst_37 : f32 to vector<16x16xf32>
    %61 = arith.mulf %60, %58 : vector<16x16xf32>
    %62 = math.tanh %61 : vector<16x16xf32>
    %cst_38 = arith.constant 1.000000e+00 : f32
    %63 = vector.broadcast %cst_38 : f32 to vector<16x16xf32>
    %64 = arith.addf %62, %63 : vector<16x16xf32>
    %cst_39 = arith.constant 5.000000e-01 : f32
    %65 = vector.broadcast %cst_39 : f32 to vector<16x16xf32>
    %66 = arith.mulf %65, %64 : vector<16x16xf32>
    %67 = arith.mulf %59, %66 : vector<16x16xf32>
    %c1_40 = arith.constant 1 : index
    %c0_41 = arith.constant 0 : index
    %c0_42 = arith.constant 0 : index
    %68 = vector.load %arg4[%c1_40, %c0_41, %c0_42] : memref<3x16x16xbf16, #tpu.memory_space<vmem>>, vector<1x16x16xbf16>
    %69 = vector.shape_cast %68 : vector<1x16x16xbf16> to vector<16x16xbf16>
    %70 = arith.truncf %67 : vector<16x16xf32> to vector<16x16xbf16>
    %cst_43 = arith.constant dense<0.000000e+00> : vector<16x16xf32>
    %71 = tpu.matmul %69, %70, %cst_43 {dimension_numbers = #tpu.dot_dimension_numbers<[1], [0], [0], [1], [0, 0, 1, 1], [], []>} : vector<16x16xbf16>, vector<16x16xbf16>, vector<16x16xf32> -> vector<16x16xf32>
    %c1_44 = arith.constant 1 : index
    %c0_45 = arith.constant 0 : index
    %c0_46 = arith.constant 0 : index
    %72 = vector.load %arg5[%c1_44, %c0_45, %c0_46] : memref<3x16x1xf32, #tpu.memory_space<vmem>>, vector<1x16x1xf32>
    %73 = vector.shape_cast %72 : vector<1x16x1xf32> to vector<16x1xf32>
    %74 = vector.broadcast %73 : vector<16x1xf32> to vector<16x16xf32>
    %75 = arith.addf %71, %74 : vector<16x16xf32>
    %c1_47 = arith.constant 1 : index
    %c0_48 = arith.constant 0 : index
    %c0_49 = arith.constant 0 : index
    %76 = vector.load %arg6[%c1_47, %c0_48, %c0_49] : memref<3x8x16xbf16, #tpu.memory_space<vmem>>, vector<1x8x16xbf16>
    %77 = vector.shape_cast %76 : vector<1x8x16xbf16> to vector<8x16xbf16>
    %78 = arith.truncf %75 : vector<16x16xf32> to vector<16x16xbf16>
    %cst_50 = arith.constant dense<0.000000e+00> : vector<8x16xf32>
    %79 = tpu.matmul %77, %78, %cst_50 {dimension_numbers = #tpu.dot_dimension_numbers<[1], [0], [0], [1], [0, 0, 1, 1], [], []>} : vector<8x16xbf16>, vector<16x16xbf16>, vector<8x16xf32> -> vector<8x16xf32>
    %c1_51 = arith.constant 1 : index
    %c0_52 = arith.constant 0 : index
    %c0_53 = arith.constant 0 : index
    %80 = vector.load %arg7[%c1_51, %c0_52, %c0_53] : memref<3x8x1xf32, #tpu.memory_space<vmem>>, vector<1x8x1xf32>
    %81 = vector.shape_cast %80 : vector<1x8x1xf32> to vector<8x1xf32>
    %82 = vector.broadcast %81 : vector<8x1xf32> to vector<8x16xf32>
    %83 = arith.addf %79, %82 : vector<8x16xf32>
    %c1_54 = arith.constant 1 : index
    %c0_55 = arith.constant 0 : index
    %c0_56 = arith.constant 0 : index
    %c0_57 = arith.constant 0 : index
    %84 = vector.load %arg8[%c1_54, %c0_55, %c0_56, %c0_57] : memref<3x1x8x16xf32, #tpu.memory_space<vmem>>, vector<1x1x8x16xf32>
    %85 = vector.shape_cast %84 : vector<1x1x8x16xf32> to vector<8x16xf32>
    %86 = vector.shape_cast %83 : vector<8x16xf32> to vector<1x1x8x16xf32>
    tpu.vector_store %arg8[%c1_54, %c0_55, %c0_56, %c0_57], %86 {strides = array<i32>} : memref<3x1x8x16xf32, #tpu.memory_space<vmem>>, vector<1x1x8x16xf32>,
    %87 = arith.addf %75, %44 : vector<16x16xf32>
    %cst_58 = arith.constant 0.000000e+00 : f32
    %88 = vector.broadcast %cst_58 : f32 to vector<16x4xf32>
    %89 = vector.extract_strided_slice %87 {offsets = [0, 0], sizes = [16, 12], strides = [1, 1]} : vector<16x16xf32> to vector<16x12xf32>
    %90 = tpu.concatenate %88, %89 in 1 : vector<16x4xf32>, vector<16x12xf32> -> vector<16x16xf32>
    %91 = tpu.concatenate %90, %87 in 0 : vector<16x16xf32>, vector<16x16xf32> -> vector<32x16xf32>
    %c2 = arith.constant 2 : index
    %c0_59 = arith.constant 0 : index
    %c0_60 = arith.constant 0 : index
    %92 = vector.load %arg2[%c2, %c0_59, %c0_60] : memref<3x32x32xbf16, #tpu.memory_space<vmem>>, vector<1x32x32xbf16>
    %93 = vector.shape_cast %92 : vector<1x32x32xbf16> to vector<32x32xbf16>
    %94 = arith.truncf %91 : vector<32x16xf32> to vector<32x16xbf16>
    %cst_61 = arith.constant dense<0.000000e+00> : vector<32x16xf32>
    %95 = tpu.matmul %93, %94, %cst_61 {dimension_numbers = #tpu.dot_dimension_numbers<[1], [0], [0], [1], [0, 0, 1, 1], [], []>} : vector<32x32xbf16>, vector<32x16xbf16>, vector<32x16xf32> -> vector<32x16xf32>
    %c2_62 = arith.constant 2 : index
    %c0_63 = arith.constant 0 : index
    %c0_64 = arith.constant 0 : index
    %96 = vector.load %arg3[%c2_62, %c0_63, %c0_64] : memref<3x32x1xf32, #tpu.memory_space<vmem>>, vector<1x32x1xf32>
    %97 = vector.shape_cast %96 : vector<1x32x1xf32> to vector<32x1xf32>
    %98 = vector.broadcast %97 : vector<32x1xf32> to vector<32x16xf32>
    %99 = arith.addf %95, %98 : vector<32x16xf32>
    %100 = vector.extract_strided_slice %99 {offsets = [0, 0], sizes = [16, 16], strides = [1, 1]} : vector<32x16xf32> to vector<16x16xf32>
    %101 = vector.extract_strided_slice %99 {offsets = [16, 0], sizes = [16, 16], strides = [1, 1]} : vector<32x16xf32> to vector<16x16xf32>
    %102 = math.tanh %100 : vector<16x16xf32>
    %cst_65 = arith.constant 5.000000e-01 : f32
    %103 = vector.broadcast %cst_65 : f32 to vector<16x16xf32>
    %104 = arith.mulf %103, %101 : vector<16x16xf32>
    %105 = math.tanh %104 : vector<16x16xf32>
    %cst_66 = arith.constant 1.000000e+00 : f32
    %106 = vector.broadcast %cst_66 : f32 to vector<16x16xf32>
    %107 = arith.addf %105, %106 : vector<16x16xf32>
    %cst_67 = arith.constant 5.000000e-01 : f32
    %108 = vector.broadcast %cst_67 : f32 to vector<16x16xf32>
    %109 = arith.mulf %108, %107 : vector<16x16xf32>
    %110 = arith.mulf %102, %109 : vector<16x16xf32>
    %c2_68 = arith.constant 2 : index
    %c0_69 = arith.constant 0 : index
    %c0_70 = arith.constant 0 : index
    %111 = vector.load %arg4[%c2_68, %c0_69, %c0_70] : memref<3x16x16xbf16, #tpu.memory_space<vmem>>, vector<1x16x16xbf16>
    %112 = vector.shape_cast %111 : vector<1x16x16xbf16> to vector<16x16xbf16>
    %113 = arith.truncf %110 : vector<16x16xf32> to vector<16x16xbf16>
    %cst_71 = arith.constant dense<0.000000e+00> : vector<16x16xf32>
    %114 = tpu.matmul %112, %113, %cst_71 {dimension_numbers = #tpu.dot_dimension_numbers<[1], [0], [0], [1], [0, 0, 1, 1], [], []>} : vector<16x16xbf16>, vector<16x16xbf16>, vector<16x16xf32> -> vector<16x16xf32>
    %c2_72 = arith.constant 2 : index
    %c0_73 = arith.constant 0 : index
    %c0_74 = arith.constant 0 : index
    %115 = vector.load %arg5[%c2_72, %c0_73, %c0_74] : memref<3x16x1xf32, #tpu.memory_space<vmem>>, vector<1x16x1xf32>
    %116 = vector.shape_cast %115 : vector<1x16x1xf32> to vector<16x1xf32>
    %117 = vector.broadcast %116 : vector<16x1xf32> to vector<16x16xf32>
    %118 = arith.addf %114, %117 : vector<16x16xf32>
    %c2_75 = arith.constant 2 : index
    %c0_76 = arith.constant 0 : index
    %c0_77 = arith.constant 0 : index
    %119 = vector.load %arg6[%c2_75, %c0_76, %c0_77] : memref<3x8x16xbf16, #tpu.memory_space<vmem>>, vector<1x8x16xbf16>
    %120 = vector.shape_cast %119 : vector<1x8x16xbf16> to vector<8x16xbf16>
    %121 = arith.truncf %118 : vector<16x16xf32> to vector<16x16xbf16>
    %cst_78 = arith.constant dense<0.000000e+00> : vector<8x16xf32>
    %122 = tpu.matmul %120, %121, %cst_78 {dimension_numbers = #tpu.dot_dimension_numbers<[1], [0], [0], [1], [0, 0, 1, 1], [], []>} : vector<8x16xbf16>, vector<16x16xbf16>, vector<8x16xf32> -> vector<8x16xf32>
    %c2_79 = arith.constant 2 : index
    %c0_80 = arith.constant 0 : index
    %c0_81 = arith.constant 0 : index
    %123 = vector.load %arg7[%c2_79, %c0_80, %c0_81] : memref<3x8x1xf32, #tpu.memory_space<vmem>>, vector<1x8x1xf32>
    %124 = vector.shape_cast %123 : vector<1x8x1xf32> to vector<8x1xf32>
    %125 = vector.broadcast %124 : vector<8x1xf32> to vector<8x16xf32>
    %126 = arith.addf %122, %125 : vector<8x16xf32>
    %c2_82 = arith.constant 2 : index
    %c0_83 = arith.constant 0 : index
    %c0_84 = arith.constant 0 : index
    %c0_85 = arith.constant 0 : index
    %127 = vector.load %arg8[%c2_82, %c0_83, %c0_84, %c0_85] : memref<3x1x8x16xf32, #tpu.memory_space<vmem>>, vector<1x1x8x16xf32>
    %128 = vector.shape_cast %127 : vector<1x1x8x16xf32> to vector<8x16xf32>
    %129 = vector.shape_cast %126 : vector<8x16xf32> to vector<1x1x8x16xf32>
    tpu.vector_store %arg8[%c2_82, %c0_83, %c0_84, %c0_85], %129 {strides = array<i32>} : memref<3x1x8x16xf32, #tpu.memory_space<vmem>>, vector<1x1x8x16xf32>,
    %130 = arith.addf %118, %87 : vector<16x16xf32>
    %c0_86 = arith.constant 0 : index
    %c0_87 = arith.constant 0 : index
    %c0_88 = arith.constant 0 : index
    %131 = vector.load %arg9[%c0_86, %c0_87, %c0_88] : memref<1x16x16xf32, #tpu.memory_space<vmem>>, vector<1x16x16xf32>
    %132 = vector.shape_cast %131 : vector<1x16x16xf32> to vector<16x16xf32>
    %133 = vector.shape_cast %130 : vector<16x16xf32> to vector<1x16x16xf32>
    tpu.vector_store %arg9[%c0_86, %c0_87, %c0_88], %133 {strides = array<i32>} : memref<1x16x16xf32, #tpu.memory_space<vmem>>, vector<1x16x16xf32>,
    return
  }
  func.func @transform_0(%arg0: i32) -> (i32, i32, i32) {
    %c0_i32 = arith.constant 0 : i32
    %c0_i32_0 = arith.constant 0 : i32
    %c0_i32_1 = arith.constant 0 : i32
    return %arg0, %c0_i32, %c0_i32_0 : i32, i32, i32
  }
  func.func @transform_1(%arg0: i32) -> (i32, i32, i32) {
    %c0_i32 = arith.constant 0 : i32
    %c0_i32_0 = arith.constant 0 : i32
    %c0_i32_1 = arith.constant 0 : i32
    %c0_i32_2 = arith.constant 0 : i32
    return %c0_i32, %c0_i32_0, %c0_i32_1 : i32, i32, i32
  }
  func.func @transform_2(%arg0: i32) -> (i32, i32, i32) {
    %c0_i32 = arith.constant 0 : i32
    %c0_i32_0 = arith.constant 0 : i32
    %c0_i32_1 = arith.constant 0 : i32
    %c0_i32_2 = arith.constant 0 : i32
    return %c0_i32, %c0_i32_0, %c0_i32_1 : i32, i32, i32
  }
  func.func @transform_3(%arg0: i32) -> (i32, i32, i32) {
    %c0_i32 = arith.constant 0 : i32
    %c0_i32_0 = arith.constant 0 : i32
    %c0_i32_1 = arith.constant 0 : i32
    %c0_i32_2 = arith.constant 0 : i32
    return %c0_i32, %c0_i32_0, %c0_i32_1 : i32, i32, i32
  }
  func.func @transform_4(%arg0: i32) -> (i32, i32, i32) {
    %c0_i32 = arith.constant 0 : i32
    %c0_i32_0 = arith.constant 0 : i32
    %c0_i32_1 = arith.constant 0 : i32
    %c0_i32_2 = arith.constant 0 : i32
    return %c0_i32, %c0_i32_0, %c0_i32_1 : i32, i32, i32
  }
  func.func @transform_5(%arg0: i32) -> (i32, i32, i32) {
    %c0_i32 = arith.constant 0 : i32
    %c0_i32_0 = arith.constant 0 : i32
    %c0_i32_1 = arith.constant 0 : i32
    %c0_i32_2 = arith.constant 0 : i32
    return %c0_i32, %c0_i32_0, %c0_i32_1 : i32, i32, i32
  }
  func.func @transform_6(%arg0: i32) -> (i32, i32, i32) {
    %c0_i32 = arith.constant 0 : i32
    %c0_i32_0 = arith.constant 0 : i32
    %c0_i32_1 = arith.constant 0 : i32
    %c0_i32_2 = arith.constant 0 : i32
    return %c0_i32, %c0_i32_0, %c0_i32_1 : i32, i32, i32
  }
  func.func @transform_7(%arg0: i32) -> (i32, i32, i32, i32) {
    %c0_i32 = arith.constant 0 : i32
    %c0_i32_0 = arith.constant 0 : i32
    %c0_i32_1 = arith.constant 0 : i32
    %c0_i32_2 = arith.constant 0 : i32
    return %c0_i32, %arg0, %c0_i32_0, %c0_i32_1 : i32, i32, i32, i32
  }
  func.func @transform_8(%arg0: i32) -> (i32, i32, i32) {
    %c0_i32 = arith.constant 0 : i32
    %c0_i32_0 = arith.constant 0 : i32
    %c0_i32_1 = arith.constant 0 : i32
    return %arg0, %c0_i32, %c0_i32_0 : i32, i32, i32
  }
}

</mosaic_0001>

<bundles_post_ra>
// kernel: tpu_custom_call.1
= control target key start
LH: loop header
LB: loop body
LE: loop exit
PB: predicated region body
PF: predicated region fallthrough
CT: control target
= control target key end

     0   :  { %s1551_s0 = inlined_call_operand.vmem [shape: f32[2,16,16], index: 0, kind: input, shape index: {}]   ;;  %s1552_s1 = inlined_call_operand.vmem [shape: bf16[3,32,32], index: 1, kind: input, shape index: {}]   ;;  %s1553_s2 = inlined_call_operand.vmem [shape: f32[3,32,1], index: 2, kind: input, shape index: {}]   ;;  %s1554_s3 = inlined_call_operand.vmem [shape: bf16[3,16,16], index: 3, kind: input, shape index: {}]   ;;  %s1555_s4 = inlined_call_operand.vmem [shape: f32[3,16,1], index: 4, kind: input, shape index: {}]   ;;  %s1556_s5 = inlined_call_operand.vmem [shape: bf16[3,8,16], index: 5, kind: input, shape index: {}]   ;;  %s1557_s6 = inlined_call_operand.vmem [shape: f32[3,8,1], index: 6, kind: input, shape index: {}]   ;;  %s1558_s7 = inlined_call_operand.hbm [shape: f32[3,2,8,16], index: 7, kind: output, shape index: {0}]   ;;  %s1559_s8 = inlined_call_operand.hbm [shape: f32[2,16,16], index: 8, kind: output, shape index: {1}]  }
   0x1   :  { %1560 = sst [smem:[#allocation8_spill]] %s1551_s0 }
   0x2   :  { %1561 = sst [smem:[#allocation9_spill]] %s1552_s1 }
   0x3   :  { %1562 = sst [smem:[#allocation10_spill]] %s1553_s2 }
   0x4   :  { %1563 = sst [smem:[#allocation11_spill]] %s1554_s3 }
   0x5   :  { %14 = vsyncpa [#allocation3], 0 }
   0x6   :  { %16 = vsyncpa [#allocation3 + $0x1], 0 }
   0x7   :  { %17 = vsyncpa [#allocation5], 0 }
   0x8   :  { %19 = vsyncpa [#allocation5 + $0x1], 0  ;;  %s1283_s27 = smov 0   ;;  %s1285_s28 = smov 0  }
   0x9   :  { %s1287_s29 = smov 0   ;;  %s1289_s30 = smov 0  }
   0xa LB: > { %s1304_s9 = sadd.s32 4294967295, %s1229_s30   ;;  %s924_s10 = sadd.s32 4294967294, %s1229_s30   ;;  %s1229_s30 = sphi %s1289_s30, %s1573_s30   ;;  %s1225_s29 = sphi %s1287_s29, %s1572_s29   ;;  %s1221_s28 = sphi %s1285_s28, %s1571_s28   ;;  %s1217_s27 = sphi %s1283_s27, %s1570_s27  }
   0xb   : > { %s1308_s11 = sadd.s32 1, %s1229_s30   ;;  %s184_s12 = sadd.s32 1, %s1225_s29 }
   0xc   : > { %s181_s13 = ssub.s32 %s1229_s30, %s1308_s11  ;;  %p194_p0 = scmp.ne.s32.totalorder %s1225_s29, %s1221_s28 }
   0xd   : > { %p182_p1 = scmp.eq.s32.totalorder %s181_s13, 0  ;;  %p195_p2 = scmp.eq.s32.totalorder %s1304_s9, 1 }
   0xe   : > { %p200_p3 = scmp.ne.s32.totalorder %s1221_s28, %s1217_s27  ;;  %p201_p4 = scmp.eq.s32.totalorder %s924_s10, 1 }
   0xf   : > { %s1319_s14 = scalar_select %p182_p1, %s1225_s29, %s184_s12  }
  0x10   : > { %p1321_p5 = por %p195_p2, %p194_p0  ;;  %p1325_p6 = por %p201_p4, %p200_p3 }
  0x11   : > { %p927_p7 = scmp.ge.s32.totalorder %s1229_s30, 1  ;;  %p271_p8 = scmp.lt.s32.totalorder %s1229_s30, 3 }
  0x13   : > { %p272_p9 = pnand %p927_p7, %p271_p8 }
  0x14   : > { %p310_p10 = scmp.lt.s32.totalorder (!%p272_p9), %s1304_s9, 1  ;;  %s1566_s2 = sld [smem:[#allocation10_spill]] (!%p272_p9) }
  0x15   : > { %275 = sbr.rel (%p272_p9) target bundleno = 1464 (0x5b8), region = 48  ;;  %s1567_s0 = sld [smem:[#allocation8_spill]] (!%p272_p9) }
  0x16   : > { %s1232_s26 = smov (!%p272_p9), 1   ;;  %s1568_s1 = sld [smem:[#allocation9_spill]] (!%p272_p9) }
  0x17   : > { %s1569_s3 = sld [smem:[#allocation11_spill]] (!%p272_p9)  ;;  %s1233_s18 = smov (!%p272_p9), 2  }
  0x18   : > { %s1234_s10 = smov (!%p272_p9), 4  }
  0x1a   : > { %v338_v0 = vld [vmem:[%s1566_s2 + $0x18] sm:$0xff]  ;;  %v1231_v1 = vmov 0   ;;  %s311_s19 = scalar_select %p310_p10, %s1304_s9, 1  ;;  %v335_v5 = vld [vmem:[%s1566_s2] sm:$0xff]  ;;  %v411_v7 = vld [vmem:[%s1555_s4 + $0x8] sm:$0xff]  ;;  %vm326_vm0 = vcmask 7168  }
  0x1b   : > { %1099 = vset.pattern.permute.xlu1 %v1231_v1  ;;  %1098 = vset.pattern.permute.xlu0 %v1231_v1  ;;  %v959_v8 = vld [vmem:[%s1566_s2 + $0x38] sm:$0xff]  ;;  %v977_v9 = vld [vmem:[%s1555_s4 + $0x10] sm:$0xff]  ;;  %v336_v12 = vld [vmem:[%s1566_s2 + $0x8] sm:$0xff]  ;;  %vm369_vm3 = vcmask 261120   ;;  %vm427_vm4 = vcmask 130048   ;;  %vm480_vm5 = vcmask 15360  }
  0x1c   : > { %356 = vperm.xlu1 %1099, %v338_v0   ;;  %1100 = vset.pattern.permute.xlu2 %v1231_v1  ;;  %s1030_s20 = sshll.u32 %s311_s19, 4  ;;  %v994_v10 = vld [vmem:[%s1566_s2 + $0x50] sm:$0xff]  ;;  %v993_v13 = vld [vmem:[%s1566_s2 + $0x48] sm:$0xff]  ;;  %vm939_vm1 = vmneg %vm326_vm0  ;;  %vm639_vm8 = vcmask 31744  }
  0x1d   : > { %s314_s23 = scalar_lea.vmem %s1567_s0, %s1030_s20  ;;  %v337_v11 = vld [vmem:[%s1566_s2 + $0x10] sm:$0xff]  ;;  %346 = vperm.xlu2 %1100, %v336_v12   ;;  %v410_v16 = vld [vmem:[%s1555_s4] sm:$0xff]  ;;  %vm941_vm2 = vmpackc.low %vm939_vm1, %vm939_vm1  ;;  %s1437_s20 = sand.u32 1, %s1221_s28  }
  0x1e   : > { %v1339_v2 = vld [vmem:[%s314_s23] sm:$0xff]  ;;  %v1341_v3 = vld [vmem:[%s314_s23 + $0x8] sm:$0xff]  ;;  %v958_v14 = vld [vmem:[%s1566_s2 + $0x30] sm:$0xff]  ;;  %s1041_s21 = smul.u32 24, %s1437_s20  ;;  %s928_s13 = sshll.u32 %s1437_s20, 4 }
  0x1f   : > { %v1093_v4 = vpack.i.bf16 %v1341_v3, %v1339_v2  ;;  %v334_v6 = vpack.c.bf16 %v1341_v3, %v1339_v2  ;;  %v1031_v20 = vld [vmem:[%s1568_s1] sm:$0xff]  ;;  %v957_v22 = vld [vmem:[%s1566_s2 + $0x28] sm:$0xff]  ;;  %v978_v63 = vld [vmem:[%s1555_s4 + $0x18] sm:$0xff]  ;;  %s309_s17 = scalar_lea.vmem [#allocation4], %s928_s13  ;;  %s798_s12 = scalar_lea.sflag [#allocation5], %s1437_s20 }
  0x20   : > { %v447_v21 = vld [vmem:[%s1557_s6] sm:$0xff]  ;;  %v1032_v23 = vld [vmem:[%s1568_s1 + $0x8] sm:$0xff]  ;;  %v995_v0 = vld [vmem:[%s1566_s2 + $0x58] sm:$0xff]  ;;  %s1440_s22 = scalar_lea.vmem [#allocation2], %s1041_s21  ;;  %s1040_s21 = sshll.u32 %s1304_s9, 4 }
  0x21   : > { %1094 = vrot.lane.b32.xlu0 %v1093_v4, %s1232_s26  ;;  %382 = vmatpush.bf16.msra.mxu0 %v334_v6  ;;  %v1033_v49 = vld [vmem:[%s1569_s3] sm:$0xff]  ;;  %vm968_vm6 = vmneg %vm480_vm5  ;;  %s825_s25 = scalar_lea.hbm %s1559_s8, %s1040_s21  ;;  %s826_s26 = sshll.u32 %s309_s17, 4  ;;  %s827_s26 = int_to_ptr.vmem [resolvable:$true] %s826_s26 }
  0x22   : > { %v445_v61 = vld [vmem:[%s1556_s5] sm:$0xf]  ;;  %vm970_vm7 = vmpackc.low %vm968_vm6, %vm968_vm6 }
  0x23   : > { %v956_v62 = vld [vmem:[%s1566_s2 + $0x20] sm:$0xff]  ;;  %vm1004_vm9 = vmneg %vm639_vm8 }
  0x24   : > { %341 = vperm.xlu1 %1099, %v335_v5   ;;  %v1013_v1 = vld [vmem:[%s1555_s4 + $0x20] sm:$0xff]  ;;  %vm1006_vm10 = vmpackc.low %vm1004_vm9, %vm1004_vm9 }
  0x25   : > { %414 = vperm.xlu2 %1100, %v410_v16  }
  0x29   : > { %351 = vperm.xlu0 %1098, %v337_v11  }
  0x2c   : > { %419 = vperm.xlu1 %1099, %v411_v7  }
  0x31   : > { %507 = vperm.xlu0 %1098, %v958_v14  }
  0x34   : > { %512 = vperm.xlu1 %1099, %v959_v8   ;;  %v1034_v8 = vld [vmem:[%s1568_s1 + $0x10] sm:$0xff] }
  0x39   : > { %502 = vperm.xlu0 %1098, %v957_v22  }
  0x3c   : > { %571 = vperm.xlu1 %1099, %v977_v9  }
  0x44   : > { %666 = vperm.xlu1 %1099, %v994_v10   ;;  %v1035_v10 = vld [vmem:[%s1568_s1 + $0x18] sm:$0xff] }
  0x4c   : > { %661 = vperm.xlu1 %1099, %v993_v13  }
  0x54   : > { %450 = vperm.xlu1 %1099, %v447_v21  }
  0x77   : > { %v347_v33 = vpop.permute.xlu2 %346 }
  0x7f   : > { %v415_v51 = vpop.permute.xlu2 %414 }
  0x8e   : > { %v357_v28 = vpop.permute.xlu1 %356 }
  0x93   : > { %v1095_v15 = vpop.permute.xlu0 %1094 }
  0x94   : > { %v1097_v17 = vunpack.i.h.bf16 %v1095_v15  ;;  %v1096_v18 = vunpack.i.l.bf16 %v1095_v15 }
  0x96   : > { %v942_v19 = vpack.c.bf16 %v1097_v17, %v1096_v18  ;;  %v342_v34 = vpop.permute.xlu1 %341 }
  0x98   : > { %943 = vmatpush.bf16.msk.msra.mxu0 %vm941_vm2, %v942_v19 }
  0x9b   : > { %944 = vmatmul.msk.bf16.vlgmr.msra.gmra.mxu0 %vm369_vm3, %v1031_v20  ;;  %v352_v26 = vpop.permute.xlu0 %351 }
  0x9e   : > { %v420_v53 = vpop.permute.xlu1 %419 }
  0xa3   : > { %v508_v19 = vpop.permute.xlu0 %507 }
  0xa6   : > { %v513_v6 = vpop.permute.xlu1 %512 }
  0xab   : > { %945 = vmatmul.msk.bf16.gmra.mxu0 %vm369_vm3, %v1032_v23 }
  0xae   : > { %v572_v9 = vpop.permute.xlu1 %571 }
  0xb6   : > { %v1431_v11 = vpop.permute.xlu1 %666 }
  0xbe   : > { %v1434_v12 = vpop.permute.xlu1 %661 }
  0xc6   : > { %v451_v13 = vpop.permute.xlu1 %450 }
 0x118   : > { %v385_v24 = vpop.f32.mrf.mxu0 }
 0x119   : > { %v386_v36 = vadd.f32 %v385_v24, %v342_v34 }
 0x120   : > { %v387_v25 = vpop.f32.mrf.mxu0 }
 0x121   : > { %v388_v38 = vadd.f32 %v387_v25, %v347_v33 }
 0x128   : > { %v390_v27 = vpop.f32.mrf.mxu0 }
 0x129   : > { %v391_v29 = vadd.f32 %v390_v27, %v352_v26  ;;  %v503_v27 = vpop.permute.xlu0 %502 }
 0x12b   : > { %v397_v30 = vmul.f32 0.5, %v391_v29 }
 0x12d   : > { %1111 = vtanh.f32 %v397_v30 }
 0x130   : > { %v392_v31 = vpop.f32.mrf.mxu0 }
 0x131   : > { %v393_v32 = vadd.f32 %v392_v31, %v357_v28 }
 0x133   : > { %v398_v35 = vmul.f32 0.5, %v393_v32  ;;  %v1112_v37 = vpop.eup %1111 }
 0x134   : > { %v401_v39 = vadd.f32 1.0, %v1112_v37 }
 0x135   : > { %1113 = vtanh.f32 %v398_v35 }
 0x136   : > { %1115 = vtanh.f32 %v386_v36  ;;  %v403_v41 = vmul.f32 0.5, %v401_v39 }
 0x137   : > { %1117 = vtanh.f32 %v388_v38 }
 0x13b   : > { %v1114_v40 = vpop.eup %1113 }
 0x13c   : > { %v402_v42 = vadd.f32 1.0, %v1114_v40  ;;  %v1116_v43 = vpop.eup %1115 }
 0x13d   : > { %v1118_v45 = vpop.eup %1117  ;;  %v405_v46 = vmul.f32 %v1116_v43, %v403_v41  ;;  %v1036_v41 = vld [vmem:[%s1569_s3 + $0x8] sm:$0xff] }
 0x13e   : > { %v404_v44 = vmul.f32 0.5, %v402_v42 }
 0x140   : > { %v406_v47 = vmul.f32 %v1118_v45, %v404_v44 }
 0x142   : > { %v409_v48 = vpack.c.bf16 %v406_v47, %v405_v46 }
 0x144   : > { %438 = vmatpush.bf16.msra.mxu3 %v409_v48 }
 0x147   : > { %950 = vmatmul.msk.bf16.vlgmr.msra.gmra.mxu3 %vm427_vm4, %v1033_v49 }
 0x1ca   : > { %v440_v50 = vpop.f32.mrf.mxu3 }
 0x1cb   : > { %v441_v52 = vadd.f32 %v440_v50, %v415_v51 }
 0x1cd   : > { %v1396_v56 = vadd.f32 %v441_v52, %v1339_v2  ;;  %v985_v2 = vld [vmem:[%s1557_s6 + $0x8] sm:$0xff] }
 0x1d2   : > { %v442_v54 = vpop.f32.mrf.mxu3 }
 0x1d3   : > { %v443_v55 = vadd.f32 %v442_v54, %v420_v53  ;;  %v992_v53 = vld [vmem:[%s1566_s2 + $0x40] sm:$0xff]  ;;  %v1014_v54 = vld [vmem:[%s1555_s4 + $0x28] sm:$0xff] }
 0x1d5   : > { %v1399_v57 = vadd.f32 %v443_v55, %v1341_v3  ;;  %v446_v58 = vpack.c.bf16 %v443_v55, %v441_v52  ;;  %v984_v52 = vld [vmem:[%s1556_s5 + $0x4] sm:$0xf]  ;;  %v1021_v55 = vld [vmem:[%s1557_s6 + $0x10] sm:$0xff] }
 0x1d7   : > { %463 = vmatpush.bf16.msra.mxu2 %v446_v58  ;;  %v1101_v59 = vpack.i.bf16 %v1399_v57, %v1396_v56  ;;  %v489_v60 = vpack.c.bf16 %v1399_v57, %v1396_v56 }
 0x1d9   : > { %1102 = vrot.lane.b32.xlu2 %v1101_v59, %s1233_s18  ;;  %537 = vmatpush.bf16.msrb.mxu3 %v489_v60 }
 0x1da   : > { %951 = vmatmul.msk.bf16.vlgmr.msra.gmra.mxu2 %vm427_vm4, %v445_v61  ;;  %v1037_v61 = vld [vmem:[%s1568_s1 + $0x20] sm:$0xff] }
 0x1e1   : > { %497 = vperm.xlu2 %1100, %v956_v62  }
 0x1e9   : > { %576 = vperm.xlu2 %1100, %v978_v63  }
 0x1f1   : > { %671 = vperm.xlu2 %1100, %v995_v0  }
 0x1f9   : > { %730 = vperm.xlu2 %1100, %v1013_v1  }
 0x201   : > { %608 = vperm.xlu2 %1100, %v985_v2   ;;  %v1038_v2 = vld [vmem:[%s1568_s1 + $0x28] sm:$0xff]  ;;  %s1155_s1 = scalar_lea.hbm %s1559_s8, 32 }
 0x233   : > { %v1103_v3 = vpop.permute.xlu2 %1102 }
 0x234   : > { %v1105_v4 = vunpack.i.h.bf16 %v1103_v3  ;;  %v1104_v5 = vunpack.i.l.bf16 %v1103_v3 }
 0x236   : > { %v971_v7 = vpack.c.bf16 %v1105_v4, %v1104_v5 }
 0x238   : > { %972 = vmatpush.bf16.msk.msrb.mxu3 %vm970_vm7, %v971_v7 }
 0x23b   : > { %973 = vmatmul.msk.bf16.vlgmr.msrb.gmra.mxu3 %vm369_vm3, %v1034_v8  ;;  %v498_v25 = vpop.permute.xlu2 %497 }
 0x243   : > { %v577_v44 = vpop.permute.xlu2 %576 }
 0x24b   : > { %974 = vmatmul.msk.bf16.gmra.mxu3 %vm369_vm3, %v1035_v10 }
 0x25d   : > { %v465_v14 = vpop.f32.mrf.mxu2 }
 0x25e   : > { %v466_v15 = vadd.f32 %v465_v14, %v451_v13 }
 0x260   : > { %469 = vst.msk [vmem:[%s1440_s22] sm:$0xff] %vm427_vm4, %v466_v15 }
 0x265   : > { %v467_v16 = vpop.f32.mrf.mxu2 }
 0x2be   : > { %v540_v17 = vpop.f32.mrf.mxu3 }
 0x2bf   : > { %v541_v28 = vadd.f32 %v540_v17, %v498_v25 }
 0x2c6   : > { %v542_v18 = vpop.f32.mrf.mxu3 }
 0x2c7   : > { %v543_v30 = vadd.f32 %v542_v18, %v503_v27  ;;  %v1039_v27 = vld [vmem:[%s1569_s3 + $0x10] sm:$0xff] }
 0x2ce   : > { %v545_v20 = vpop.f32.mrf.mxu3 }
 0x2cf   : > { %v546_v21 = vadd.f32 %v545_v20, %v508_v19 }
 0x2d1   : > { %v552_v22 = vmul.f32 0.5, %v546_v21 }
 0x2d3   : > { %1119 = vtanh.f32 %v552_v22 }
 0x2d6   : > { %v547_v23 = vpop.f32.mrf.mxu3 }
 0x2d7   : > { %v548_v24 = vadd.f32 %v547_v23, %v513_v6 }
 0x2d9   : > { %v553_v26 = vmul.f32 0.5, %v548_v24  ;;  %v1120_v29 = vpop.eup %1119 }
 0x2da   : > { %v556_v31 = vadd.f32 1.0, %v1120_v29 }
 0x2db   : > { %1121 = vtanh.f32 %v553_v26 }
 0x2dc   : > { %1123 = vtanh.f32 %v541_v28  ;;  %v558_v33 = vmul.f32 0.5, %v556_v31 }
 0x2dd   : > { %1125 = vtanh.f32 %v543_v30 }
 0x2e1   : > { %v1122_v32 = vpop.eup %1121 }
 0x2e2   : > { %v557_v34 = vadd.f32 1.0, %v1122_v32  ;;  %v1124_v35 = vpop.eup %1123 }
 0x2e3   : > { %v1126_v37 = vpop.eup %1125  ;;  %v560_v38 = vmul.f32 %v1124_v35, %v558_v33  ;;  %v1020_v35 = vld [vmem:[%s1556_s5 + $0x8] sm:$0xf] }
 0x2e4   : > { %v559_v36 = vmul.f32 0.5, %v557_v34 }
 0x2e6   : > { %v561_v39 = vmul.f32 %v1126_v37, %v559_v36 }
 0x2e8   : > { %v565_v40 = vpack.c.bf16 %v561_v39, %v560_v38 }
 0x2ea   : > { %594 = vmatpush.bf16.msra.mxu1 %v565_v40 }
 0x2ed   : > { %983 = vmatmul.msk.bf16.vlgmr.msra.gmra.mxu1 %vm427_vm4, %v1036_v41 }
 0x36a   : > { %v596_v42 = vpop.f32.mrf.mxu1 }
 0x36b   : > { %v597_v43 = vadd.f32 %v596_v42, %v572_v9 }
 0x36d   : > { %v1449_v47 = vadd.f32 %v597_v43, %v1396_v56  ;;  %v672_v56 = vpop.permute.xlu2 %671 }
 0x372   : > { %v598_v45 = vpop.f32.mrf.mxu1 }
 0x373   : > { %v599_v46 = vadd.f32 %v598_v45, %v577_v44 }
 0x375   : > { %v1452_v48 = vadd.f32 %v599_v46, %v1399_v57  ;;  %v603_v49 = vpack.c.bf16 %v599_v46, %v597_v43  ;;  %v731_v62 = vpop.permute.xlu2 %730 }
 0x377   : > { %621 = vmatpush.bf16.msrb.mxu2 %v603_v49  ;;  %v1106_v50 = vpack.i.bf16 %v1452_v48, %v1449_v47  ;;  %v648_v51 = vpack.c.bf16 %v1452_v48, %v1449_v47 }
 0x379   : > { %1107 = vrot.lane.b32.xlu0 %v1106_v50, %s1234_s10  ;;  %696 = vmatpush.bf16.msrb.mxu1 %v648_v51  ;;  %s828_s10 = sshll.u32 %s825_s25, 4  ;;  %s829_s10 = int_to_ptr.hbm [resolvable:$true] %s828_s10 }
 0x37a   : > { %986 = vmatmul.msk.bf16.vlgmr.msrb.gmra.mxu2 %vm427_vm4, %v984_v52  ;;  %s1149_s13 = sshra.s32 %s829_s10, 4  ;;  %s1150_s13 = int_to_ptr.hbm [resolvable:$true] %s1149_s13 }
 0x37b   : > { %s1151_s0 = scalar_lea.hbm %s1150_s13, 16  ;;  %p1156_p0 = scmp.lt.s32.totalorder %s1150_s13, %s1559_s8 }
 0x37c   : > { %p1152_p11 = scmp.ne.s32.totalorder %s1150_s13, %s1151_s0  ;;  %p1157_p1 = scmp.lt.s32.totalorder %s1155_s1, %s1151_s0 }
 0x37d   : > { %v609_v63 = vpop.permute.xlu2 %608 }
 0x37e   : > { %p1153_p12 = pnand %p1152_p11, %p1321_p5  ;;  %p1158_p2 = por %p1157_p1, %p1156_p0 }
 0x380   : > { %p1154_p13 = pneg %p1153_p12 }
 0x381   : > { %656 = vperm.xlu0 %1098, %v992_v53  }
 0x382   : > { %p1159_p3 = pnand %p1158_p2, %p1154_p13 }
 0x389   : > { %735 = vperm.xlu0 %1098, %v1014_v54  }
 0x391   : > { %767 = vperm.xlu0 %1098, %v1021_v55  }
 0x3eb   : > { %v1108_v57 = vpop.permute.xlu0 %1107 }
 0x3ec   : > { %v1110_v58 = vunpack.i.h.bf16 %v1108_v57  ;;  %v1109_v59 = vunpack.i.l.bf16 %v1108_v57 }
 0x3ee   : > { %v1007_v60 = vpack.c.bf16 %v1110_v58, %v1109_v59 }
 0x3f0   : > { %1008 = vmatpush.bf16.msk.msrb.mxu1 %vm1006_vm10, %v1007_v60 }
 0x3f3   : > { %1009 = vmatmul.msk.bf16.vlgmr.msrb.gmra.mxu1 %vm369_vm3, %v1037_v61  ;;  %v657_v13 = vpop.permute.xlu0 %656 }
 0x3fb   : > { %v736_v30 = vpop.permute.xlu0 %735 }
 0x3fd   : > { %v623_v0 = vpop.f32.mrf.mxu2 }
 0x3fe   : > { %v624_v1 = vadd.f32 %v623_v0, %v609_v63 }
 0x400   : > { %987 = vst.msk [vmem:[%s1440_s22 + $0x8] sm:$0xff] %vm427_vm4, %v624_v1 }
 0x403   : > { %1010 = vmatmul.msk.bf16.gmra.mxu1 %vm369_vm3, %v1038_v2 }
 0x405   : > { %v625_v3 = vpop.f32.mrf.mxu2 }
 0x470   : > { %v699_v4 = vpop.f32.mrf.mxu1 }
 0x471   : > { %v700_v15 = vadd.f32 %v699_v4, %v657_v13 }
 0x478   : > { %v701_v5 = vpop.f32.mrf.mxu1 }
 0x479   : > { %v702_v17 = vadd.f32 %v701_v5, %v1434_v12 }
 0x480   : > { %v704_v6 = vpop.f32.mrf.mxu1 }
 0x481   : > { %v705_v7 = vadd.f32 %v704_v6, %v1431_v11 }
 0x483   : > { %v711_v8 = vmul.f32 0.5, %v705_v7 }
 0x485   : > { %1127 = vtanh.f32 %v711_v8 }
 0x488   : > { %v706_v9 = vpop.f32.mrf.mxu1 }
 0x489   : > { %v707_v10 = vadd.f32 %v706_v9, %v672_v56 }
 0x48b   : > { %v712_v14 = vmul.f32 0.5, %v707_v10  ;;  %v1128_v16 = vpop.eup %1127 }
 0x48c   : > { %v715_v18 = vadd.f32 1.0, %v1128_v16 }
 0x48d   : > { %1129 = vtanh.f32 %v712_v14 }
 0x48e   : > { %1131 = vtanh.f32 %v700_v15  ;;  %v717_v20 = vmul.f32 0.5, %v715_v18 }
 0x48f   : > { %1133 = vtanh.f32 %v702_v17 }
 0x493   : > { %v1130_v19 = vpop.eup %1129 }
 0x494   : > { %v716_v21 = vadd.f32 1.0, %v1130_v19  ;;  %v1132_v22 = vpop.eup %1131 }
 0x495   : > { %v1134_v23 = vpop.eup %1133  ;;  %v719_v24 = vmul.f32 %v1132_v22, %v717_v20 }
 0x496   : > { %v718_v11 = vmul.f32 0.5, %v716_v21 }
 0x498   : > { %v720_v25 = vmul.f32 %v1134_v23, %v718_v11 }
 0x49a   : > { %v724_v26 = vpack.c.bf16 %v720_v25, %v719_v24 }
 0x49c   : > { %753 = vmatpush.bf16.msra.mxu2 %v724_v26 }
 0x49f   : > { %1019 = vmatmul.msk.bf16.vlgmr.msra.gmra.mxu2 %vm427_vm4, %v1039_v27 }
 0x522   : > { %v755_v12 = vpop.f32.mrf.mxu2 }
 0x523   : > { %v756_v28 = vadd.f32 %v755_v12, %v731_v62 }
 0x525   : > { %v788_v29 = vadd.f32 %v756_v28, %v1449_v47 }
 0x527   : > { %790 = vst.msk [vmem:[%s309_s17] sm:$0xff] %vm427_vm4, %v788_v29 }
 0x52a   : > { %v757_v31 = vpop.f32.mrf.mxu2 }
 0x52b   : > { %v758_v32 = vadd.f32 %v757_v31, %v736_v30 }
 0x52d   : > { %v789_v33 = vadd.f32 %v758_v32, %v1452_v48  ;;  %v762_v34 = vpack.c.bf16 %v758_v32, %v756_v28 }
 0x52f   : > { %791 = vst.msk [vmem:[%s309_s17 + $0x8] sm:$0xff] %vm427_vm4, %v789_v33  ;;  %780 = vmatpush.bf16.msrb.mxu0 %v762_v34 }
 0x532   : > { %1022 = vmatmul.msk.bf16.vlgmr.msrb.gmra.mxu0 %vm427_vm4, %v1020_v35 }
 0x533   : > { %1162 = shalt.err (!%p1159_p3)
}
 0x534   : > { %s1235_s17 = smov 128   ;;  %s1236_s21 = smov 8   ;;  %v768_v36 = vpop.permute.xlu0 %767 }
 0x535   : > { %1043 = dma.vmem_to_hbm [thread:$0]  (%p1321_p5), %s827_s26, 256, %s829_s10, %s798_s12, %s1235_s17, %s1235_s17, %s1236_s21  }
 0x536   : > { %s1025_s23 = sshll.u32 %s1304_s9, 3  ;;  %s809_s1 = sshll.u32 %s1440_s22, 4  ;;  %s810_s1 = int_to_ptr.vmem [resolvable:$true] %s809_s1 }
 0x537   : > { %s808_s0 = scalar_lea.hbm %s1558_s7, %s1025_s23  ;;  %s793_s25 = scalar_lea.sflag [#allocation3], %s1437_s20 }
 0x538   : > { %s811_s24 = sshll.u32 %s808_s0, 4  ;;  %s1183_s10 = scalar_lea.hbm %s1558_s7, 48  ;;  %s812_s24 = int_to_ptr.hbm [resolvable:$true] %s811_s24 }
 0x539   : > { %s1177_s13 = sshra.s32 %s812_s24, 4  ;;  %s1178_s13 = int_to_ptr.hbm [resolvable:$true] %s1177_s13 }
 0x53a   : > { %s1179_s18 = scalar_lea.hbm %s1178_s13, 24  ;;  %p1184_p9 = scmp.lt.s32.totalorder %s1178_s13, %s1558_s7 }
 0x53b   : > { %p1180_p4 = scmp.ne.s32.totalorder %s1178_s13, %s1179_s18  ;;  %p1185_p10 = scmp.lt.s32.totalorder %s1183_s10, %s1179_s18 }
 0x53d   : > { %p1181_p7 = pnand %p1180_p4, %p1321_p5  ;;  %p1186_p11 = por %p1185_p10, %p1184_p9 }
 0x53f   : > { %p1182_p8 = pneg %p1181_p7 }
 0x541   : > { %p1187_p12 = pnand %p1186_p11, %p1182_p8 }
 0x5af   : > { %v782_v37 = vpop.f32.mrf.mxu0 }
 0x5b0   : > { %v783_v38 = vadd.f32 %v782_v37, %v768_v36 }
 0x5b2   : > { %1023 = vst.msk [vmem:[%s1440_s22 + $0x10] sm:$0xff] %vm427_vm4, %v783_v38 }
 0x5b3   : > { %1190 = shalt.err (!%p1187_p12)
}
 0x5b4   : > { %s1237_s20 = smov 256  }
 0x5b5   : > { %1042 = dma.vmem_to_hbm [thread:$0]  (%p1321_p5), %s810_s1, 384, %s812_s24, %s793_s25, %s1235_s17, %s1237_s20, %s1236_s21  }
 0x5b7   : > { %v784_v39 = vpop.f32.mrf.mxu0 }
 0x5b8 PF: > { %p1053_p13 = scmp.ge.s32.totalorder %s1229_s30, 2  ;;  %s843_s22 = sand.u32 1, %s1217_s27  }
 0x5b9   : > { %s844_s23 = scalar_lea.sflag [#allocation3], %s843_s22 }
 0x5ba   : > { %p1047_p0 = pnand %p1053_p13, %p1325_p6 }
 0x5bc   : > { %p1048_p1 = pneg %p1047_p0 }
 0x5be   : > { %1208 = dma.done.wait (%p1048_p1), %s844_s23, 384  }
 0x5bf   : > { %1210 = vsyncadd (%p1048_p1), %s844_s23, 4294966912  ;;  %s854_s2 = scalar_lea.sflag [#allocation5], %s843_s22 }
 0x5c0   : > { %1212 = dma.done.wait (%p1048_p1), %s854_s2, 256  }
 0x5c1   : > { %1214 = vsyncadd (%p1048_p1), %s854_s2, 4294967040  ;;  %p22_p5 = scmp.ge.s32.totalorder %s1308_s11, 4   ;;  %s1570_s27 = smov %s1221_s28 }
 0x5c2   : > { %s1571_s28 = smov %s1225_s29  ;;  %s1572_s29 = smov %s1319_s14 }
 0x5c3   : > { %s1573_s30 = smov %s1308_s11  ;;  %24 = sbr.rel (!%p22_p5) target bundleno = 10 (0xa), region = 114 }
 0x5c8   :  { %860 = vsyncpa [#allocation3], 1 }
 0x5c9   :  { %862 = vsyncpa [#allocation3 + $0x1], 1 }
 0x5ca   :  { %863 = vsyncpa [#allocation5], 1 }
 0x5cb   :  { %865 = vsyncpa [#allocation5 + $0x1], 1 }

</bundles_post_ra>
